<compile_context>
chip_gen: v7x
topology: tpu7x:2x2x1
jax: 0.10.0
libtpu: 0.0.40
codegen_flags: <defaults>
</compile_context>

<pallas_src>
import functools

import jax
import jax.numpy as jnp
from jax.experimental import pallas as pl
from jax.experimental.pallas import tpu as pltpu

LANE = 128


def _round_up(n, m):
    return ((n + m - 1) // m) * m


def _pad_axis_to(x, axis, size):
    pad = size - x.shape[axis]
    if pad <= 0:
        return x
    widths = [(0, 0)] * x.ndim
    widths[axis] = (0, pad)
    return jnp.pad(x, widths)


# ---------------------------------------------------------------------------
# Kernel 1: per-image conv (im2col matmul) + bias + ReLU + global-avg-pool
# ---------------------------------------------------------------------------

def conv_pool_kernel(p_ref, cw_ref, cb_ref, rep_ref):
    """One image per grid step.

    p_ref   : (1, HW, CKK)       bf16 im2col patches for this image (unpadded K)
    cw_ref  : (CKK, CMID_PAD)    bf16 conv weight (rows ordered kh, kw, c)
    cb_ref  : (1, CMID_PAD)      f32 conv bias
    rep_ref : (1, 1, CMID_PAD)   f32 pooled representation for this image
    """
    patches = p_ref[0]                                               # (HW, CKK)
    y = jnp.dot(patches, cw_ref[...], preferred_element_type=jnp.float32)
    y = jnp.maximum(y + cb_ref[...], 0.0)                            # (HW, CMID_PAD) f32
    inv_hw = 1.0 / float(y.shape[0])
    # Global average pool = segmented mean over this image's HW rows
    # (sublane/XLU reduction; no pooling matrix, no extra MXU pass).
    rep_ref[0] = jnp.sum(y, axis=0, keepdims=True) * inv_hw


# ---------------------------------------------------------------------------
# Kernel 2: projector MLP  Linear -> BatchNorm1d (train batch stats) -> ReLU -> Linear
# ---------------------------------------------------------------------------

def projector_kernel(rep_ref, w1_ref, b1_ref, g_ref, be_ref, w2_ref, b2_ref,
                     proj_ref):
    """Full-batch projector (BatchNorm needs batch statistics).

    rep_ref  : (B, CMID_PAD)  f32
    w1_ref   : (CMID_PAD, H_PAD) bf16 ; b1/g/be : (1, H_PAD) f32
    w2_ref   : (H_PAD, P_PAD) bf16 ; b2 : (1, P_PAD) f32
    proj_ref : (B, P_PAD) f32
    """
    rep = rep_ref[...]
    h = jnp.dot(rep.astype(jnp.bfloat16), w1_ref[...],
                preferred_element_type=jnp.float32) + b1_ref[...]    # (B, H_PAD)
    # One-pass biased batch statistics (PyTorch BatchNorm1d training mode).
    mean = jnp.mean(h, axis=0, keepdims=True)
    mean_sq = jnp.mean(h * h, axis=0, keepdims=True)
    var = jnp.maximum(mean_sq - mean * mean, 0.0)
    hn = (h - mean) * jax.lax.rsqrt(var + 1e-5)
    hn = hn * g_ref[...] + be_ref[...]          # padded lanes stay 0 (gamma zero-padded)
    hr = jnp.maximum(hn, 0.0)
    proj_ref[...] = (jnp.dot(hr.astype(jnp.bfloat16), w2_ref[...],
                             preferred_element_type=jnp.float32) + b2_ref[...])


# ---------------------------------------------------------------------------
# Forward wrapper (jitted; all int metadata is static)
# ---------------------------------------------------------------------------

@functools.partial(jax.jit, static_argnums=(2, 3, 4))
def netwrapper_forward(x_nchw, kp, cmid, proj_size, return_projection=True):
    """NetWrapper.forward(x) -> (projection, representation) (or representation only)."""
    B, C, H, W = x_nchw.shape
    HW = H * W
    CKK = kp["cw"].shape[0]            # 9 * C (unpadded)
    CMID_PAD = kp["cw"].shape[1]
    H_PAD = kp["w1"].shape[1]
    P_PAD = kp["w2"].shape[1]

    # --- im2col in NHWC: 9 shifted slices concatenated on the channel axis.
    # No 36->128 lane padding (dominant HBM input stays minimal); bf16 halves bytes.
    x_nhwc = jnp.transpose(x_nchw, (0, 2, 3, 1))
    xp = jnp.pad(x_nhwc, ((0, 0), (1, 1), (1, 1), (0, 0)))
    taps = [xp[:, kh:kh + H, kw:kw + W, :] for kh in range(3) for kw in range(3)]
    patches = jnp.concatenate(taps, axis=-1).reshape(B, HW, CKK).astype(jnp.bfloat16)

    # --- Stage 1: conv + ReLU + global-avg-pool, one image per grid step.
    rep_pad3 = pl.pallas_call(
        conv_pool_kernel,
        out_shape=jax.ShapeDtypeStruct((B, 1, CMID_PAD), jnp.float32),
        grid=(B,),
        in_specs=[
            pl.BlockSpec((1, HW, CKK), lambda b: (b, 0, 0)),      # per-image patches
            pl.BlockSpec((CKK, CMID_PAD), lambda b: (0, 0)),      # conv weight (resident)
            pl.BlockSpec((1, CMID_PAD), lambda b: (0, 0)),        # conv bias
        ],
        out_specs=pl.BlockSpec((1, 1, CMID_PAD), lambda b: (b, 0, 0)),
        compiler_params=pltpu.CompilerParams(
            dimension_semantics=("parallel",)),                   # both TCs on v7x
    )(patches, kp["cw"], kp["cb"])

    rep_pad = rep_pad3.reshape(B, CMID_PAD)                       # flatten() on (B, Cmid)
    representation = rep_pad[:, :cmid]
    if not return_projection:
        return representation

    # --- Stage 2: projector (full batch; BN batch stats forbid batch tiling).
    proj_pad = pl.pallas_call(
        projector_kernel,
        out_shape=jax.ShapeDtypeStruct((B, P_PAD), jnp.float32),
        grid=(1,),
        in_specs=[
            pl.BlockSpec((B, CMID_PAD), lambda i: (0, 0)),
            pl.BlockSpec((CMID_PAD, H_PAD), lambda i: (0, 0)),
            pl.BlockSpec((1, H_PAD), lambda i: (0, 0)),           # b1
            pl.BlockSpec((1, H_PAD), lambda i: (0, 0)),           # gamma (zero-padded!)
            pl.BlockSpec((1, H_PAD), lambda i: (0, 0)),           # beta
            pl.BlockSpec((H_PAD, P_PAD), lambda i: (0, 0)),
            pl.BlockSpec((1, P_PAD), lambda i: (0, 0)),           # b2
        ],
        out_specs=pl.BlockSpec((B, P_PAD), lambda i: (0, 0)),
        compiler_params=pltpu.CompilerParams(
            dimension_semantics=("arbitrary",)),
    )(rep_pad, kp["w1"], kp["b1"], kp["g"], kp["be"], kp["w2"], kp["b2"])

    projection = proj_pad[:, :proj_size]
    return projection, representation


# ---------------------------------------------------------------------------
# Parameter init (PyTorch layout) + one-time kernel-layout preparation
# ---------------------------------------------------------------------------

def init_params(key, c_in, c_mid, rep_dim, proj_hidden, proj_size):
    ks = jax.random.split(key, 6)

    def uni(k, shape, fan_in):
        bound = 1.0 / jnp.sqrt(float(fan_in))
        return jax.random.uniform(k, shape, jnp.float32, -bound, bound)

    return {
        # backbone conv (PyTorch OIHW layout). Classifier head omitted: its output
        # is discarded by the layer=-2 hook and never affects forward outputs.
        "conv_w": uni(ks[0], (c_mid, c_in, 3, 3), c_in * 9),
        "conv_b": uni(ks[1], (c_mid,), c_in * 9),
        # projector MLP(dim, projection_size, hidden_size), weights stored (in, out)
        "p_w1": uni(ks[2], (rep_dim, proj_hidden), rep_dim),
        "p_b1": uni(ks[3], (proj_hidden,), rep_dim),
        "p_gamma": jnp.ones((proj_hidden,), jnp.float32),
        "p_beta": jnp.zeros((proj_hidden,), jnp.float32),
        "p_w2": uni(ks[4], (proj_hidden, proj_size), proj_hidden),
        "p_b2": uni(ks[5], (proj_size,), proj_hidden),
    }


def prepare_kernel_params(params):
    """Reshape / transpose / pad / cast weights ONCE into kernel-ready layout."""
    cmid, c_in = params["conv_w"].shape[0], params["conv_w"].shape[1]
    ckk = 9 * c_in
    hidden = params["p_w1"].shape[1]
    proj = params["p_w2"].shape[1]

    CMID_PAD = _round_up(cmid, LANE)
    H_PAD = _round_up(hidden, LANE)
    P_PAD = _round_up(proj, LANE)

    # conv weight rows ordered (kh, kw, c) to match the NHWC patch concat order.
    # K axis (ckk=36) is intentionally NOT padded to 128 (saves HBM bandwidth).
    cw = params["conv_w"].transpose(2, 3, 1, 0).reshape(ckk, cmid)
    cw = _pad_axis_to(cw, 1, CMID_PAD).astype(jnp.bfloat16)
    cb = _pad_axis_to(params["conv_b"].reshape(1, cmid), 1, CMID_PAD).astype(jnp.float32)

    w1 = _pad_axis_to(_pad_axis_to(params["p_w1"], 0, CMID_PAD), 1, H_PAD).astype(jnp.bfloat16)
    b1 = _pad_axis_to(params["p_b1"].reshape(1, hidden), 1, H_PAD).astype(jnp.float32)
    # IMPORTANT: gamma/beta must be ZERO-padded so padded lanes stay exactly 0
    # through BN (exactness of the lane padding relies on this).
    g = _pad_axis_to(params["p_gamma"].reshape(1, hidden), 1, H_PAD).astype(jnp.float32)
    be = _pad_axis_to(params["p_beta"].reshape(1, hidden), 1, H_PAD).astype(jnp.float32)
    w2 = _pad_axis_to(_pad_axis_to(params["p_w2"], 0, H_PAD), 1, P_PAD).astype(jnp.bfloat16)
    b2 = _pad_axis_to(params["p_b2"].reshape(1, proj), 1, P_PAD).astype(jnp.float32)

    return {"cw": cw, "cb": cb, "w1": w1, "b1": b1, "g": g, "be": be, "w2": w2, "b2": b2}


if __name__ == "__main__":
    key = jax.random.PRNGKey(0)
    kx, kparam = jax.random.split(key)

    B, C_in, H, W = 2, 4, 16, 16         # input (NCHW, like PyTorch)
    C_mid = 32                           # hooked representation dim
    proj_hidden = 64                     # projection_hidden_size
    proj_size = 32                       # projection_size

    x = jax.random.normal(kx, (B, C_in, H, W), jnp.float32)
    params = init_params(kparam, C_in, C_mid, C_mid, proj_hidden, proj_size)
    kp = jax.block_until_ready(prepare_kernel_params(params))   # one-time layout prep

    projection, representation = netwrapper_forward(x, kp, C_mid, proj_size, True)
    jax.block_until_ready((projection, representation))

    assert projection.shape == (B, proj_size)
    assert representation.shape == (B, C_mid)
    assert bool(jnp.all(jnp.isfinite(projection))) and bool(jnp.all(jnp.isfinite(representation)))
    print("KERNEL_OK")
</pallas_src>

<mosaic_0001>
module attributes {stable_mosaic.version = 11 : i64} {
  func.func @conv_pool_kernel(%arg0: i32, %arg1: memref<1x256x36xbf16, #tpu.memory_space<vmem>>, %arg2: memref<36x128xbf16, #tpu.memory_space<vmem>>, %arg3: memref<1x128xf32, #tpu.memory_space<vmem>>, %arg4: memref<1x1x128xf32, #tpu.memory_space<vmem>>) attributes {dimension_semantics = [#tpu.dimension_semantics<parallel>], iteration_bounds = array<i64: 2>, scalar_prefetch = 0 : i64, scratch_operands = 0 : i64, tpu.core_type = #tpu.core_type<tc>, window_params = [{transform_indices = @transform_0, window_bounds = array<i64: 1, 256, 36>}, {pipeline_mode = #tpu.pipeline_mode<synchronous>, transform_indices = @transform_1, window_bounds = array<i64: 36, 128>}, {pipeline_mode = #tpu.pipeline_mode<synchronous>, transform_indices = @transform_2, window_bounds = array<i64: 1, 128>}, {transform_indices = @transform_3, window_bounds = array<i64: 1, 1, 128>}]} {
    %c0 = arith.constant 0 : index
    %c0_0 = arith.constant 0 : index
    %c0_1 = arith.constant 0 : index
    %0 = vector.load %arg1[%c0, %c0_0, %c0_1] : memref<1x256x36xbf16, #tpu.memory_space<vmem>>, vector<1x256x36xbf16>
    %1 = vector.shape_cast %0 : vector<1x256x36xbf16> to vector<256x36xbf16>
    %c0_2 = arith.constant 0 : index
    %c0_3 = arith.constant 0 : index
    %2 = vector.load %arg2[%c0_2, %c0_3] : memref<36x128xbf16, #tpu.memory_space<vmem>>, vector<36x128xbf16>
    %cst = arith.constant dense<0.000000e+00> : vector<256x128xf32>
    %3 = tpu.matmul %1, %2, %cst {dimension_numbers = #tpu.dot_dimension_numbers<[1], [0], [0], [1], [0, 0, 1, 1], [], []>} : vector<256x36xbf16>, vector<36x128xbf16>, vector<256x128xf32> -> vector<256x128xf32>
    %c0_4 = arith.constant 0 : index
    %c0_5 = arith.constant 0 : index
    %4 = vector.load %arg3[%c0_4, %c0_5] : memref<1x128xf32, #tpu.memory_space<vmem>>, vector<1x128xf32>
    %5 = vector.broadcast %4 : vector<1x128xf32> to vector<256x128xf32>
    %6 = arith.addf %3, %5 : vector<256x128xf32>
    %cst_6 = arith.constant 0.000000e+00 : f32
    %7 = vector.broadcast %cst_6 : f32 to vector<256x128xf32>
    %8 = arith.maximumf %6, %7 : vector<256x128xf32>
    %cst_7 = arith.constant dense<0.000000e+00> : vector<128xf32>
    %9 = vector.multi_reduction <add>, %8, %cst_7 [0] : vector<256x128xf32> to vector<128xf32>
    %10 = vector.shape_cast %9 : vector<128xf32> to vector<1x128xf32>
    %cst_8 = arith.constant 3.906250e-03 : f32
    %11 = vector.broadcast %cst_8 : f32 to vector<1x128xf32>
    %12 = arith.mulf %10, %11 : vector<1x128xf32>
    %c0_9 = arith.constant 0 : index
    %c0_10 = arith.constant 0 : index
    %c0_11 = arith.constant 0 : index
    %13 = vector.load %arg4[%c0_9, %c0_10, %c0_11] : memref<1x1x128xf32, #tpu.memory_space<vmem>>, vector<1x1x128xf32>
    %14 = vector.shape_cast %13 : vector<1x1x128xf32> to vector<1x128xf32>
    %15 = vector.shape_cast %12 : vector<1x128xf32> to vector<1x1x128xf32>
    tpu.vector_store %arg4[%c0_9, %c0_10, %c0_11], %15 {strides = array<i32>} : memref<1x1x128xf32, #tpu.memory_space<vmem>>, vector<1x1x128xf32>,
    return
  }
  func.func @transform_0(%arg0: i32) -> (i32, i32, i32) {
    %c0_i32 = arith.constant 0 : i32
    %c0_i32_0 = arith.constant 0 : i32
    %c0_i32_1 = arith.constant 0 : i32
    return %arg0, %c0_i32, %c0_i32_0 : i32, i32, i32
  }
  func.func @transform_1(%arg0: i32) -> (i32, i32) {
    %c0_i32 = arith.constant 0 : i32
    %c0_i32_0 = arith.constant 0 : i32
    %c0_i32_1 = arith.constant 0 : i32
    return %c0_i32, %c0_i32_0 : i32, i32
  }
  func.func @transform_2(%arg0: i32) -> (i32, i32) {
    %c0_i32 = arith.constant 0 : i32
    %c0_i32_0 = arith.constant 0 : i32
    %c0_i32_1 = arith.constant 0 : i32
    return %c0_i32, %c0_i32_0 : i32, i32
  }
  func.func @transform_3(%arg0: i32) -> (i32, i32, i32) {
    %c0_i32 = arith.constant 0 : i32
    %c0_i32_0 = arith.constant 0 : i32
    %c0_i32_1 = arith.constant 0 : i32
    return %arg0, %c0_i32, %c0_i32_0 : i32, i32, i32
  }
}

module attributes {stable_mosaic.version = 11 : i64} {
  func.func @projector_kernel(%arg0: i32, %arg1: memref<2x128xf32, #tpu.memory_space<vmem>>, %arg2: memref<128x128xbf16, #tpu.memory_space<vmem>>, %arg3: memref<1x128xf32, #tpu.memory_space<vmem>>, %arg4: memref<1x128xf32, #tpu.memory_space<vmem>>, %arg5: memref<1x128xf32, #tpu.memory_space<vmem>>, %arg6: memref<128x128xbf16, #tpu.memory_space<vmem>>, %arg7: memref<1x128xf32, #tpu.memory_space<vmem>>, %arg8: memref<2x128xf32, #tpu.memory_space<vmem>>) attributes {dimension_semantics = [#tpu.dimension_semantics<arbitrary>], iteration_bounds = array<i64: 1>, scalar_prefetch = 0 : i64, scratch_operands = 0 : i64, tpu.core_type = #tpu.core_type<tc>, window_params = [{pipeline_mode = #tpu.pipeline_mode<synchronous>, transform_indices = @transform_0, window_bounds = array<i64: 2, 128>}, {pipeline_mode = #tpu.pipeline_mode<synchronous>, transform_indices = @transform_1, window_bounds = array<i64: 128, 128>}, {pipeline_mode = #tpu.pipeline_mode<synchronous>, transform_indices = @transform_2, window_bounds = array<i64: 1, 128>}, {pipeline_mode = #tpu.pipeline_mode<synchronous>, transform_indices = @transform_3, window_bounds = array<i64: 1, 128>}, {pipeline_mode = #tpu.pipeline_mode<synchronous>, transform_indices = @transform_4, window_bounds = array<i64: 1, 128>}, {pipeline_mode = #tpu.pipeline_mode<synchronous>, transform_indices = @transform_5, window_bounds = array<i64: 128, 128>}, {pipeline_mode = #tpu.pipeline_mode<synchronous>, transform_indices = @transform_6, window_bounds = array<i64: 1, 128>}, {pipeline_mode = #tpu.pipeline_mode<synchronous>, transform_indices = @transform_7, window_bounds = array<i64: 2, 128>}]} {
    %c0 = arith.constant 0 : index
    %c0_0 = arith.constant 0 : index
    %0 = vector.load %arg1[%c0, %c0_0] : memref<2x128xf32, #tpu.memory_space<vmem>>, vector<2x128xf32>
    %1 = arith.truncf %0 : vector<2x128xf32> to vector<2x128xbf16>
    %c0_1 = arith.constant 0 : index
    %c0_2 = arith.constant 0 : index
    %2 = vector.load %arg2[%c0_1, %c0_2] : memref<128x128xbf16, #tpu.memory_space<vmem>>, vector<128x128xbf16>
    %cst = arith.constant dense<0.000000e+00> : vector<2x128xf32>
    %3 = tpu.matmul %1, %2, %cst {dimension_numbers = #tpu.dot_dimension_numbers<[1], [0], [0], [1], [0, 0, 1, 1], [], []>} : vector<2x128xbf16>, vector<128x128xbf16>, vector<2x128xf32> -> vector<2x128xf32>
    %c0_3 = arith.constant 0 : index
    %c0_4 = arith.constant 0 : index
    %4 = vector.load %arg3[%c0_3, %c0_4] : memref<1x128xf32, #tpu.memory_space<vmem>>, vector<1x128xf32>
    %5 = vector.broadcast %4 : vector<1x128xf32> to vector<2x128xf32>
    %6 = arith.addf %3, %5 : vector<2x128xf32>
    %cst_5 = arith.constant dense<0.000000e+00> : vector<128xf32>
    %7 = vector.multi_reduction <add>, %6, %cst_5 [0] : vector<2x128xf32> to vector<128xf32>
    %8 = vector.shape_cast %7 : vector<128xf32> to vector<1x128xf32>
    %cst_6 = arith.constant 2.000000e+00 : f32
    %9 = vector.broadcast %cst_6 : f32 to vector<1x128xf32>
    %10 = arith.divf %8, %9 : vector<1x128xf32>
    %11 = arith.mulf %6, %6 : vector<2x128xf32>
    %cst_7 = arith.constant dense<0.000000e+00> : vector<128xf32>
    %12 = vector.multi_reduction <add>, %11, %cst_7 [0] : vector<2x128xf32> to vector<128xf32>
    %13 = vector.shape_cast %12 : vector<128xf32> to vector<1x128xf32>
    %cst_8 = arith.constant 2.000000e+00 : f32
    %14 = vector.broadcast %cst_8 : f32 to vector<1x128xf32>
    %15 = arith.divf %13, %14 : vector<1x128xf32>
    %16 = arith.mulf %10, %10 : vector<1x128xf32>
    %17 = arith.subf %15, %16 : vector<1x128xf32>
    %cst_9 = arith.constant 0.000000e+00 : f32
    %18 = vector.broadcast %cst_9 : f32 to vector<1x128xf32>
    %19 = arith.maximumf %17, %18 : vector<1x128xf32>
    %20 = vector.broadcast %10 : vector<1x128xf32> to vector<2x128xf32>
    %21 = arith.subf %6, %20 : vector<2x128xf32>
    %cst_10 = arith.constant 9.99999974E-6 : f32
    %22 = vector.broadcast %cst_10 : f32 to vector<1x128xf32>
    %23 = arith.addf %19, %22 : vector<1x128xf32>
    %24 = math.rsqrt %23 : vector<1x128xf32>
    %25 = vector.broadcast %24 : vector<1x128xf32> to vector<2x128xf32>
    %26 = arith.mulf %21, %25 : vector<2x128xf32>
    %c0_11 = arith.constant 0 : index
    %c0_12 = arith.constant 0 : index
    %27 = vector.load %arg4[%c0_11, %c0_12] : memref<1x128xf32, #tpu.memory_space<vmem>>, vector<1x128xf32>
    %28 = vector.broadcast %27 : vector<1x128xf32> to vector<2x128xf32>
    %29 = arith.mulf %26, %28 : vector<2x128xf32>
    %c0_13 = arith.constant 0 : index
    %c0_14 = arith.constant 0 : index
    %30 = vector.load %arg5[%c0_13, %c0_14] : memref<1x128xf32, #tpu.memory_space<vmem>>, vector<1x128xf32>
    %31 = vector.broadcast %30 : vector<1x128xf32> to vector<2x128xf32>
    %32 = arith.addf %29, %31 : vector<2x128xf32>
    %cst_15 = arith.constant 0.000000e+00 : f32
    %33 = vector.broadcast %cst_15 : f32 to vector<2x128xf32>
    %34 = arith.maximumf %32, %33 : vector<2x128xf32>
    %35 = arith.truncf %34 : vector<2x128xf32> to vector<2x128xbf16>
    %c0_16 = arith.constant 0 : index
    %c0_17 = arith.constant 0 : index
    %36 = vector.load %arg6[%c0_16, %c0_17] : memref<128x128xbf16, #tpu.memory_space<vmem>>, vector<128x128xbf16>
    %cst_18 = arith.constant dense<0.000000e+00> : vector<2x128xf32>
    %37 = tpu.matmul %35, %36, %cst_18 {dimension_numbers = #tpu.dot_dimension_numbers<[1], [0], [0], [1], [0, 0, 1, 1], [], []>} : vector<2x128xbf16>, vector<128x128xbf16>, vector<2x128xf32> -> vector<2x128xf32>
    %c0_19 = arith.constant 0 : index
    %c0_20 = arith.constant 0 : index
    %38 = vector.load %arg7[%c0_19, %c0_20] : memref<1x128xf32, #tpu.memory_space<vmem>>, vector<1x128xf32>
    %39 = vector.broadcast %38 : vector<1x128xf32> to vector<2x128xf32>
    %40 = arith.addf %37, %39 : vector<2x128xf32>
    %c0_21 = arith.constant 0 : index
    %c0_22 = arith.constant 0 : index
    %41 = vector.load %arg8[%c0_21, %c0_22] : memref<2x128xf32, #tpu.memory_space<vmem>>, vector<2x128xf32>
    tpu.vector_store %arg8[%c0_21, %c0_22], %40 {strides = array<i32>} : memref<2x128xf32, #tpu.memory_space<vmem>>, vector<2x128xf32>,
    return
  }
  func.func @transform_0(%arg0: i32) -> (i32, i32) {
    %c0_i32 = arith.constant 0 : i32
    %c0_i32_0 = arith.constant 0 : i32
    %c0_i32_1 = arith.constant 0 : i32
    return %c0_i32, %c0_i32_0 : i32, i32
  }
  func.func @transform_1(%arg0: i32) -> (i32, i32) {
    %c0_i32 = arith.constant 0 : i32
    %c0_i32_0 = arith.constant 0 : i32
    %c0_i32_1 = arith.constant 0 : i32
    return %c0_i32, %c0_i32_0 : i32, i32
  }
  func.func @transform_2(%arg0: i32) -> (i32, i32) {
    %c0_i32 = arith.constant 0 : i32
    %c0_i32_0 = arith.constant 0 : i32
    %c0_i32_1 = arith.constant 0 : i32
    return %c0_i32, %c0_i32_0 : i32, i32
  }
  func.func @transform_3(%arg0: i32) -> (i32, i32) {
    %c0_i32 = arith.constant 0 : i32
    %c0_i32_0 = arith.constant 0 : i32
    %c0_i32_1 = arith.constant 0 : i32
    return %c0_i32, %c0_i32_0 : i32, i32
  }
  func.func @transform_4(%arg0: i32) -> (i32, i32) {
    %c0_i32 = arith.constant 0 : i32
    %c0_i32_0 = arith.constant 0 : i32
    %c0_i32_1 = arith.constant 0 : i32
    return %c0_i32, %c0_i32_0 : i32, i32
  }
  func.func @transform_5(%arg0: i32) -> (i32, i32) {
    %c0_i32 = arith.constant 0 : i32
    %c0_i32_0 = arith.constant 0 : i32
    %c0_i32_1 = arith.constant 0 : i32
    return %c0_i32, %c0_i32_0 : i32, i32
  }
  func.func @transform_6(%arg0: i32) -> (i32, i32) {
    %c0_i32 = arith.constant 0 : i32
    %c0_i32_0 = arith.constant 0 : i32
    %c0_i32_1 = arith.constant 0 : i32
    return %c0_i32, %c0_i32_0 : i32, i32
  }
  func.func @transform_7(%arg0: i32) -> (i32, i32) {
    %c0_i32 = arith.constant 0 : i32
    %c0_i32_0 = arith.constant 0 : i32
    %c0_i32_1 = arith.constant 0 : i32
    return %c0_i32, %c0_i32_0 : i32, i32
  }
}

</mosaic_0001>

<bundles_post_ra>
// kernel: netwrapper_forward.3
= control target key start
LH: loop header
LB: loop body
LE: loop exit
PB: predicated region body
PF: predicated region fallthrough
CT: control target
= control target key end

     0   :  { %v434_v1 = vmov 0.0   ;;  %vm435_vm0 = vmmov 0   ;;  %s552_s0 = inlined_call_operand.vmem [shape: f32[2,128], index: 0, kind: input, shape index: {}]   ;;  %s553_s1 = inlined_call_operand.vmem [shape: bf16[128,128], index: 1, kind: input, shape index: {}]   ;;  %s554_s2 = inlined_call_operand.vmem [shape: f32[1,128], index: 2, kind: input, shape index: {}]   ;;  %s555_s3 = inlined_call_operand.vmem [shape: f32[1,128], index: 3, kind: input, shape index: {}]   ;;  %s556_s4 = inlined_call_operand.vmem [shape: f32[1,128], index: 4, kind: input, shape index: {}]   ;;  %s557_s5 = inlined_call_operand.vmem [shape: bf16[128,128], index: 5, kind: input, shape index: {}]   ;;  %s558_s6 = inlined_call_operand.vmem [shape: f32[1,128], index: 6, kind: input, shape index: {}]   ;;  %s559_s7 = inlined_call_operand.hbm [shape: f32[2,128], index: 7, kind: output, shape index: {}]  }
   0x1   :  { %v392_v0 = vld [vmem:[%s553_s1] sm:$0xff]   ;;  %349 = vmatprep.subr.bf16.mxu0 %v434_v1  ;;  %369 = vmatprep.subr.bf16.mxu1 %v434_v1  ;;  %v393_v2 = vld [vmem:[%s553_s1 + $0x8] sm:$0xff]   ;;  %v394_v3 = vld [vmem:[%s553_s1 + $0x10] sm:$0xff]  }
   0x2   :  { %350 = vmatpush3.bf16.msra.mxu0 %v392_v0  ;;  %365 = vmatprep.mubr.msk.bf16.mxu0 %vm435_vm0, %v434_v1  ;;  %v395_v4 = vld [vmem:[%s553_s1 + $0x18] sm:$0xff]   ;;  %v396_v5 = vld [vmem:[%s553_s1 + $0x20] sm:$0xff]  }
   0x3   :  { %351 = vmatprep.subr.bf16.mxu0 %v434_v1  ;;  %385 = vmatprep.mubr.msk.bf16.mxu1 %vm435_vm0, %v434_v1 }
   0x6   :  { %352 = vmatpush3.bf16.msra.mxu0 %v393_v2 }
   0x7   :  { %353 = vmatprep.subr.bf16.mxu0 %v434_v1 }
   0xa   :  { %354 = vmatpush3.bf16.msra.mxu0 %v394_v3 }
   0xb   :  { %355 = vmatprep.subr.bf16.mxu0 %v434_v1 }
   0xe   :  { %356 = vmatpush3.bf16.msra.mxu0 %v395_v4 }
   0xf   :  { %12 = vsyncpa [#allocation3], 0  ;;  %357 = vmatprep.subr.bf16.mxu0 %v434_v1  ;;  %v397_v6 = vld [vmem:[%s553_s1 + $0x28] sm:$0xff]   ;;  %v398_v7 = vld [vmem:[%s553_s1 + $0x30] sm:$0xff]   ;;  %vm141_vm1 = vcmask 1041408   ;;  %s436_s16 = smov [#allocation2]  }
  0x10   :  { %v399_v8 = vld [vmem:[%s553_s1 + $0x38] sm:$0xff]   ;;  %v28_v9 = vld [vmem:[%s552_s0] sm:$0x3]  ;;  %v401_v12 = vld [vmem:[%s557_s5 + $0x8] sm:$0xff]   ;;  %s303_s17 = sshll.u32 %s436_s16, 4  ;;  %s304_s17 = int_to_ptr.vmem [resolvable:$true] %s303_s17 }
  0x11   :  { %v29_v10 = vpack.c.bf16 %v28_v9, %v28_v9  ;;  %v400_v11 = vld [vmem:[%s557_s5] sm:$0xff]   ;;  %v402_v13 = vld [vmem:[%s557_s5 + $0x10] sm:$0xff]   ;;  %v403_v14 = vld [vmem:[%s557_s5 + $0x18] sm:$0xff]   ;;  %p415_p1 = scmp.lt.s32.totalorder %s304_s17, %s304_s17 }
  0x12   :  { %358 = vmatpush3.bf16.msra.mxu0 %v396_v5  ;;  %370 = vmatpush3.bf16.msra.mxu1 %v400_v11  ;;  %v404_v15 = vld [vmem:[%s557_s5 + $0x20] sm:$0xff]   ;;  %v405_v16 = vld [vmem:[%s557_s5 + $0x28] sm:$0xff]   ;;  %v406_v17 = vld [vmem:[%s557_s5 + $0x30] sm:$0xff]  }
  0x13   :  { %359 = vmatprep.subr.bf16.mxu0 %v434_v1  ;;  %371 = vmatprep.subr.bf16.mxu1 %v434_v1  ;;  %v407_v18 = vld [vmem:[%s557_s5 + $0x38] sm:$0xff]   ;;  %v311_v19 = vld [vmem:[%s554_s2] ss:$0 sm:$0xff] }
  0x14   :  { %v320_v48 = vld [vmem:[%s555_s3] ss:$0 sm:$0xff]  ;;  %s410_s3 = scalar_lea.vmem %s304_s17, 32 }
  0x15   :  { %v321_v50 = vld [vmem:[%s556_s4] ss:$0 sm:$0xff]  ;;  %p411_p0 = scmp.ne.s32.totalorder %s304_s17, %s410_s3  ;;  %p416_p2 = scmp.lt.s32.totalorder %s410_s3, %s410_s3 }
  0x16   :  { %360 = vmatpush3.bf16.msra.mxu0 %v397_v6  ;;  %372 = vmatpush3.bf16.msra.mxu1 %v401_v12  ;;  %v322_v55 = vld [vmem:[%s558_s6] ss:$0 sm:$0xff] }
  0x17   :  { %361 = vmatprep.subr.bf16.mxu0 %v434_v1  ;;  %373 = vmatprep.subr.bf16.mxu1 %v434_v1  ;;  %p417_p3 = por %p416_p2, %p415_p1 }
  0x19   :  { %p418_p4 = pnand %p417_p3, %p411_p0 }
  0x1a   :  { %362 = vmatpush3.bf16.msra.mxu0 %v398_v7  ;;  %374 = vmatpush3.bf16.msra.mxu1 %v402_v13 }
  0x1b   :  { %363 = vmatprep.subr.bf16.mxu0 %v434_v1  ;;  %375 = vmatprep.subr.bf16.mxu1 %v434_v1 }
  0x1e   :  { %364 = vmatpush3.bf16.msra.mxu0 %v399_v8  ;;  %376 = vmatpush3.bf16.msra.mxu1 %v403_v14 }
  0x1f   :  { %377 = vmatprep.subr.bf16.mxu1 %v434_v1 }
  0x21   :  { %366 = vmatmul.mubr.bf16.vlgmr.msra.gmra.mrb[0].mxu0 %v29_v10 }
  0x22   :  { %378 = vmatpush3.bf16.msra.mxu1 %v404_v15 }
  0x23   :  { %379 = vmatprep.subr.bf16.mxu1 %v434_v1 }
  0x26   :  { %380 = vmatpush3.bf16.msra.mxu1 %v405_v16 }
  0x27   :  { %381 = vmatprep.subr.bf16.mxu1 %v434_v1 }
  0x2a   :  { %382 = vmatpush3.bf16.msra.mxu1 %v406_v17 }
  0x2b   :  { %383 = vmatprep.subr.bf16.mxu1 %v434_v1 }
  0x2e   :  { %384 = vmatpush3.bf16.msra.mxu1 %v407_v18 }
  0xf4   :  { %v135_v20 = vpop.f32.mrb[0].mxu0 }
  0xf5   :  { %v136_v21 = vadd.f32 %v311_v19, %v135_v20  ;;  %v367_v22 = vpop.f32.mrb[1].mxu0 }
  0xf6   :  { %v138_v23 = vpop.f32.mrb[2].mxu0 }
  0xf7   :  { %v142_v24 = vsel %vm141_vm1, %v136_v21, 0.0  ;;  %v151_v25 = vmul.f32 %v136_v21, %v136_v21  ;;  %v368_v26 = vpop.f32.mrb[3].mxu0 }
  0xf8   :  { %v143_v27 = vrot.slane %v142_v24, 4 }
  0xf9   :  { %v152_v28 = vsel %vm141_vm1, %v151_v25, 0.0 }
  0xfa   :  { %v144_v29 = vadd.f32 %v143_v27, %v142_v24  ;;  %v153_v30 = vrot.slane %v152_v28, 4 }
  0xfc   :  { %v145_v31 = vrot.slane %v144_v29, 2  ;;  %v154_v32 = vadd.f32 %v153_v30, %v152_v28 }
  0xfe   :  { %v146_v33 = vadd.f32 %v145_v31, %v144_v29  ;;  %v155_v34 = vrot.slane %v154_v32, 2 }
 0x100   :  { %v147_v35 = vrot.slane %v146_v33, 1  ;;  %v156_v36 = vadd.f32 %v155_v34, %v154_v32 }
 0x102   :  { %v148_v37 = vadd.f32 %v147_v35, %v146_v33  ;;  %v157_v38 = vrot.slane %v156_v36, 1 }
 0x104   :  { %v150_v39 = vmul.f32 0.5, %v148_v37  ;;  %v158_v40 = vadd.f32 %v157_v38, %v156_v36 }
 0x106   :  { %v159_v41 = vmul.f32 0.5, %v158_v40  ;;  %v160_v42 = vmul.f32 %v150_v39, %v150_v39  ;;  %v163_v46 = vsub.f32 %v136_v21, %v150_v39 }
 0x108   :  { %v161_v43 = vsub.f32 %v159_v41, %v160_v42 }
 0x10a   :  { %v162_v44 = vmax.f32 %v161_v43, 0.0 }
 0x10c   :  { %v164_v45 = vadd.f32 1e-05, %v162_v44 }
 0x10e   :  { %408 = vrsqrt.f32 %v164_v45 }
 0x118   :  { %v409_v47 = vpop.eup %408 }
 0x119   :  { %v166_v49 = vmul.f32 %v409_v47, %v163_v46 }
 0x11b   :  { %v174_v51 = vmul.f32 %v320_v48, %v166_v49 }
 0x11d   :  { %v182_v52 = vadd.f32 %v321_v50, %v174_v51 }
 0x11f   :  { %v183_v53 = vmax.f32 %v182_v52, 0.0 }
 0x121   :  { %v184_v54 = vpack.c.bf16 %v183_v53, %v183_v53 }
 0x123   :  { %386 = vmatmul.mubr.bf16.vlgmr.msra.gmra.mrb[0].mxu1 %v184_v54 }
 0x1f6   :  { %v290_v56 = vpop.f32.mrb[0].mxu1 }
 0x1f7   :  { %v291_v57 = vadd.f32 %v322_v55, %v290_v56  ;;  %v387_v58 = vpop.f32.mrb[1].mxu1 }
 0x1f8   :  { %v293_v59 = vpop.f32.mrb[2].mxu1 }
 0x1f9   :  { %296 = vst [vmem:[#allocation2] sm:$0x3] %v291_v57  ;;  %v388_v60 = vpop.f32.mrb[3].mxu1 }
 0x1fa   :  { %421 = shalt.err (!%p418_p4)
}
 0x1fb   :  { %s422_s6 = scalar_lea.hbm %s559_s7, 32 }
 0x1fc   :  { %p423_p5 = scmp.ne.s32.totalorder %s559_s7, %s422_s6  ;;  %p426_p6 = scmp.lt.u32.totalorder %s422_s6, %s559_s7 }
 0x1fe   :  { %p428_p7 = pnand %p426_p6, %p423_p5 }
 0x200   :  { %431 = shalt.err (!%p428_p7)
}
 0x201   :  { %306 = dma.vmem_to_hbm [thread:$0]  %s304_s17, 32, %s559_s7, [#allocation3]  }
 0x202   :  { %432 = dma.done.wait [#allocation3], 32  }
 0x203   :  { %433 = vsyncadd [#allocation3], 4294967264 }
 0x204   :  { %310 = vsyncpa [#allocation3], 1 }

// kernel: netwrapper_forward.2
= control target key start
LH: loop header
LB: loop body
LE: loop exit
PB: predicated region body
PF: predicated region fallthrough
CT: control target
= control target key end

     0   :  { %s805_s12 = smov 0   ;;  %s924_s0 = inlined_call_operand.vmem [shape: bf16[2,256,36], index: 0, kind: input, shape index: {}]   ;;  %s925_s1 = inlined_call_operand.vmem [shape: bf16[36,128], index: 1, kind: input, shape index: {}]   ;;  %s926_s2 = inlined_call_operand.vmem [shape: f32[1,128], index: 2, kind: input, shape index: {}]   ;;  %s927_s3 = inlined_call_operand.vmem [shape: f32[2,1,128], index: 3, kind: output, shape index: {}]  }
   0x1 LB: > { %s639_s13 = sadd.s32 4294967295, %s783_s12   ;;  %p643_p0 = scmp.ge.s32.totalorder %s783_s12, 1  ;;  %s783_s12 = sphi %s805_s12, %s13_s12  }
   0x2   : > { %p137_p1 = scmp.lt.s32.totalorder %s783_s12, 3 }
   0x4   : > { %p138_p2 = pnand %p643_p0, %p137_p1 }
   0x5   : > { %v758_v0 = vld [vmem:[%s925_s1] sm:$0xff] (!%p138_p2)   ;;  %v759_v1 = vld [vmem:[%s925_s1 + $0x8] sm:$0xff] (!%p138_p2)   ;;  %p159_p3 = scmp.lt.s32.totalorder (!%p138_p2), %s639_s13, 1  ;;  %v760_v2 = vld [vmem:[%s925_s1 + $0x10] ss:$0 sps:$4 sm:$0x33] (!%p138_p2)  }
   0x6   : > { %141 = sbr.rel (%p138_p2) target bundleno = 314 (0x13a), region = 32  ;;  %704 = vmatprep.subr.bf16.mxu0 (!%p138_p2), %v758_v0  ;;  %742 = vmatprep.subr.bf16.mxu1 (!%p138_p2), %v758_v0  ;;  %vm356_vm0 = vcmask (!%p138_p2), 1041408   ;;  %vm307_vm1 = vcmask (!%p138_p2), 293888   ;;  %v865_v20 = vld [vmem:[%s926_s2] ss:$0 sm:$0xff] (!%p138_p2) }
   0x7   : > { %705 = vmatpush3.bf16.msra.mxu0 (!%p138_p2), %v758_v0  ;;  %745 = vmatpush3.bf16.msra.mxu1 (!%p138_p2), %v758_v0  ;;  %v358_v4 = vsel (!%p138_p2), %vm356_vm0, %v760_v2, 0 }
   0x8   : > { %706 = vmatprep.subr.bf16.mxu0 (!%p138_p2), %v759_v1  ;;  %743 = vmatprep.subr.bf16.mxu1 (!%p138_p2), %v759_v1 }
   0xb   : > { %707 = vmatpush3.bf16.msra.mxu0 (!%p138_p2), %v759_v1  ;;  %746 = vmatpush3.bf16.msra.mxu1 (!%p138_p2), %v759_v1 }
   0xc   : > { %748 = vmatprep.subr.msk.bf16.mxu0 (!%p138_p2), %vm356_vm0, %v760_v2  ;;  %749 = vmatprep.subr.msk.bf16.mxu1 (!%p138_p2), %vm356_vm0, %v760_v2 }
   0xd   : > { %s929_s13 = smov (!%p159_p3, %s639_s13), 1 }
   0xe   : > { %s684_s20 = sshll.u32 %s929_s13, 7  ;;  %s166_s28 = scalar_lea.vmem %s927_s3, %s929_s13 }
   0xf   : > { %s828_s23 = scalar_lea.vmem %s924_s0, %s684_s20  ;;  %709 = vmatpush3.bf16.msra.mxu0 %v358_v4  ;;  %747 = vmatpush3.bf16.msra.mxu1 %v358_v4 }
  0x10   : > { %v761_v3 = vld [vmem:[%s828_s23] sm:$0xff]   ;;  %v762_v5 = vld [vmem:[%s828_s23 + $0x8] sm:$0xff]   ;;  %v763_v6 = vld [vmem:[%s828_s23 + $0x10] sm:$0xff]  }
  0x11   : > { %710 = vmatprep.mubr.msk.bf16.mxu0 %vm307_vm1, %v761_v3  ;;  %v769_v7 = vld [vmem:[%s828_s23 + $0x40] sm:$0xff]   ;;  %v770_v8 = vld [vmem:[%s828_s23 + $0x48] sm:$0xff]   ;;  %v771_v9 = vld [vmem:[%s828_s23 + $0x50] sm:$0xff]  }
  0x12   : > { %711 = vmatmul.mubr.msk.bf16.vlgmr.msra.gmra.mrb[0].mxu0 %vm307_vm1, %v762_v5  ;;  %726 = vmatprep.mubr.msk.bf16.mxu1 %vm307_vm1, %v769_v7  ;;  %v764_v10 = vld [vmem:[%s828_s23 + $0x18] sm:$0xff]   ;;  %v765_v11 = vld [vmem:[%s828_s23 + $0x20] sm:$0xff]   ;;  %v766_v14 = vld [vmem:[%s828_s23 + $0x28] sm:$0xff]  }
  0x13   : > { %714 = vmatprep.mubr.msk.bf16.mxu0 %vm307_vm1, %v763_v6  ;;  %727 = vmatmul.mubr.msk.bf16.vlgmr.msra.gmra.mrb[0].mxu1 %vm307_vm1, %v770_v8  ;;  %v772_v12 = vld [vmem:[%s828_s23 + $0x58] sm:$0xff]   ;;  %v773_v13 = vld [vmem:[%s828_s23 + $0x60] sm:$0xff]   ;;  %v767_v15 = vld [vmem:[%s828_s23 + $0x30] sm:$0xff]  }
  0x14   : > { %730 = vmatprep.mubr.msk.bf16.mxu1 %vm307_vm1, %v771_v9  ;;  %v774_v16 = vld [vmem:[%s828_s23 + $0x68] sm:$0xff]   ;;  %v775_v17 = vld [vmem:[%s828_s23 + $0x70] sm:$0xff]   ;;  %v768_v18 = vld [vmem:[%s828_s23 + $0x38] sm:$0xff]  }
  0x15   : > { %v776_v19 = vld [vmem:[%s828_s23 + $0x78] sm:$0xff]  }
  0x1a   : > { %715 = vmatmul.mubr.msk.bf16.gmra.mrb[4].mxu0 %vm307_vm1, %v764_v10 }
  0x1b   : > { %718 = vmatprep.mubr.msk.bf16.mxu0 %vm307_vm1, %v765_v11  ;;  %731 = vmatmul.mubr.msk.bf16.gmra.mrb[4].mxu1 %vm307_vm1, %v772_v12 }
  0x1c   : > { %734 = vmatprep.mubr.msk.bf16.mxu1 %vm307_vm1, %v773_v13 }
  0x22   : > { %719 = vmatmul.mubr.msk.bf16.gmra.mrb[8].mxu0 %vm307_vm1, %v766_v14 }
  0x23   : > { %722 = vmatprep.mubr.msk.bf16.mxu0 %vm307_vm1, %v767_v15  ;;  %735 = vmatmul.mubr.msk.bf16.gmra.mrb[8].mxu1 %vm307_vm1, %v774_v16 }
  0x24   : > { %738 = vmatprep.mubr.msk.bf16.mxu1 %vm307_vm1, %v775_v17 }
  0x2a   : > { %723 = vmatmul.mubr.msk.bf16.gmra.mrb[12].mxu0 %vm307_vm1, %v768_v18 }
  0x2b   : > { %739 = vmatmul.mubr.msk.bf16.gmra.mrb[12].mxu1 %vm307_vm1, %v776_v19 }
  0xe5   : > { %v712_v21 = vpop.f32.mrb[0].mxu0 }
  0xe6   : > { %v394_v22 = vpop.f32.mrb[1].mxu0  ;;  %v403_v26 = vadd.f32 %v712_v21, %v865_v20  ;;  %v870_v28 = vpop.f32.mrb[0].mxu1 }
  0xe7   : > { %v395_v23 = vadd.f32 %v865_v20, %v394_v22  ;;  %v713_v24 = vpop.f32.mrb[2].mxu0  ;;  %v872_v29 = vpop.f32.mrb[1].mxu1 }
  0xe8   : > { %v397_v25 = vpop.f32.mrb[3].mxu0  ;;  %v406_v31 = vadd.f32 %v713_v24, %v865_v20  ;;  %v875_v33 = vpop.f32.mrb[2].mxu1  ;;  %v523_v35 = vmax.f32 %v403_v26, 0.0 }
  0xe9   : > { %v398_v27 = vadd.f32 %v865_v20, %v397_v25  ;;  %v521_v30 = vmax.f32 %v395_v23, 0.0  ;;  %v877_v34 = vpop.f32.mrb[3].mxu1 }
  0xea   : > { %v524_v39 = vmax.f32 %v406_v31, 0.0 }
  0xeb   : > { %v522_v32 = vmax.f32 %v398_v27, 0.0 }
  0xed   : > { %v553_v36 = vadd.f32 %v522_v32, %v521_v30  ;;  %v716_v37 = vpop.f32.mrb[4].mxu0  ;;  %v459_v32 = vadd.f32 %v865_v20, %v872_v29 }
  0xee   : > { %v410_v38 = vpop.f32.mrb[5].mxu0  ;;  %v419_v44 = vadd.f32 %v716_v37, %v865_v20  ;;  %v882_v48 = vpop.f32.mrb[4].mxu1 }
  0xef   : > { %v554_v40 = vadd.f32 %v553_v36, %v523_v35  ;;  %v411_v41 = vadd.f32 %v865_v20, %v410_v38  ;;  %v717_v42 = vpop.f32.mrb[6].mxu0  ;;  %v474_v49 = vpop.f32.mrb[5].mxu1 }
  0xf0   : > { %v413_v43 = vpop.f32.mrb[7].mxu0  ;;  %v422_v51 = vadd.f32 %v717_v42, %v865_v20  ;;  %v885_v53 = vpop.f32.mrb[6].mxu1  ;;  %v527_v55 = vmax.f32 %v419_v44, 0.0  ;;  %v462_v42 = vadd.f32 %v865_v20, %v877_v34  ;;  %v475_v29 = vadd.f32 %v865_v20, %v474_v49 }
  0xf1   : > { %v525_v45 = vmax.f32 %v411_v41, 0.0  ;;  %v555_v46 = vadd.f32 %v554_v40, %v524_v39  ;;  %v414_v47 = vadd.f32 %v865_v20, %v413_v43  ;;  %v477_v54 = vpop.f32.mrb[7].mxu1  ;;  %v537_v41 = vmax.f32 %v459_v32, 0.0 }
  0xf2   : > { %v528_v59 = vmax.f32 %v422_v51, 0.0  ;;  %v467_v43 = vadd.f32 %v870_v28, %v865_v20  ;;  %v483_v34 = vadd.f32 %v882_v48, %v865_v20 }
  0xf3   : > { %v556_v50 = vadd.f32 %v555_v46, %v525_v45  ;;  %v526_v52 = vmax.f32 %v414_v47, 0.0  ;;  %v470_v46 = vadd.f32 %v875_v33, %v865_v20  ;;  %v538_v47 = vmax.f32 %v462_v42, 0.0 }
  0xf5   : > { %v557_v56 = vadd.f32 %v556_v50, %v526_v52  ;;  %v720_v57 = vpop.f32.mrb[8].mxu0  ;;  %v539_v50 = vmax.f32 %v467_v43, 0.0  ;;  %v540_v52 = vmax.f32 %v470_v46, 0.0 }
  0xf6   : > { %v426_v58 = vpop.f32.mrb[9].mxu0  ;;  %v435_v0 = vadd.f32 %v720_v57, %v865_v20  ;;  %v736_v4 = vpop.f32.mrb[8].mxu1  ;;  %v478_v57 = vadd.f32 %v865_v20, %v477_v54 }
  0xf7   : > { %v558_v60 = vadd.f32 %v557_v56, %v527_v55  ;;  %v427_v61 = vadd.f32 %v865_v20, %v426_v58  ;;  %v721_v62 = vpop.f32.mrb[10].mxu0  ;;  %v490_v5 = vpop.f32.mrb[9].mxu1  ;;  %v541_v56 = vmax.f32 %v475_v29, 0.0  ;;  %v499_v54 = vadd.f32 %v736_v4, %v865_v20 }
  0xf8   : > { %v429_v63 = vpop.f32.mrb[11].mxu0  ;;  %v438_v7 = vadd.f32 %v721_v62, %v865_v20  ;;  %v737_v9 = vpop.f32.mrb[10].mxu1  ;;  %v531_v11 = vmax.f32 %v435_v0, 0.0  ;;  %v491_v33 = vadd.f32 %v865_v20, %v490_v5 }
  0xf9   : > { %v529_v1 = vmax.f32 %v427_v61, 0.0  ;;  %v559_v2 = vadd.f32 %v558_v60, %v528_v59  ;;  %v430_v3 = vadd.f32 %v865_v20, %v429_v63  ;;  %v493_v10 = vpop.f32.mrb[11].mxu1  ;;  %v486_v59 = vadd.f32 %v885_v53, %v865_v20 }
  0xfa   : > { %v532_v15 = vmax.f32 %v438_v7, 0.0  ;;  %v542_v60 = vmax.f32 %v478_v57, 0.0  ;;  %v543_v61 = vmax.f32 %v483_v34, 0.0  ;;  %v545_v0 = vmax.f32 %v491_v33, 0.0 }
  0xfb   : > { %v560_v6 = vadd.f32 %v559_v2, %v529_v1  ;;  %v530_v8 = vmax.f32 %v430_v3, 0.0  ;;  %v544_v62 = vmax.f32 %v486_v59, 0.0  ;;  %v494_v1 = vadd.f32 %v865_v20, %v493_v10 }
  0xfc   : > { %v502_v48 = vadd.f32 %v737_v9, %v865_v20  ;;  %v547_v53 = vmax.f32 %v499_v54, 0.0 }
  0xfd   : > { %v561_v12 = vadd.f32 %v560_v6, %v530_v8  ;;  %v724_v13 = vpop.f32.mrb[12].mxu0  ;;  %v546_v6 = vmax.f32 %v494_v1, 0.0 }
  0xfe   : > { %v442_v14 = vpop.f32.mrb[13].mxu0  ;;  %v451_v21 = vadd.f32 %v724_v13, %v865_v20  ;;  %v740_v25 = vpop.f32.mrb[12].mxu1 }
  0xff   : > { %v562_v16 = vadd.f32 %v561_v12, %v531_v11  ;;  %v443_v17 = vadd.f32 %v865_v20, %v442_v14  ;;  %v725_v18 = vpop.f32.mrb[14].mxu0  ;;  %v506_v26 = vpop.f32.mrb[13].mxu1  ;;  %v548_v11 = vmax.f32 %v502_v48, 0.0  ;;  %v515_v14 = vadd.f32 %v740_v25, %v865_v20 }
 0x100   : > { %v445_v19 = vpop.f32.mrb[15].mxu0  ;;  %v454_v30 = vadd.f32 %v725_v18, %v865_v20  ;;  %v741_v35 = vpop.f32.mrb[14].mxu1  ;;  %v535_v37 = vmax.f32 %v451_v21, 0.0  ;;  %v507_v7 = vadd.f32 %v865_v20, %v506_v26 }
 0x101   : > { %v533_v22 = vmax.f32 %v443_v17, 0.0  ;;  %v563_v23 = vadd.f32 %v562_v16, %v532_v15  ;;  %v446_v24 = vadd.f32 %v865_v20, %v445_v19  ;;  %v509_v36 = vpop.f32.mrb[15].mxu1  ;;  %v518_v4 = vadd.f32 %v741_v35, %v865_v20 }
 0x102   : > { %v536_v39 = vmax.f32 %v454_v30, 0.0  ;;  %v549_v12 = vmax.f32 %v507_v7, 0.0  ;;  %v510_v13 = vadd.f32 %v865_v20, %v509_v36  ;;  %v551_v17 = vmax.f32 %v515_v14, 0.0 }
 0x103   : > { %v564_v27 = vadd.f32 %v563_v23, %v533_v22  ;;  %v534_v31 = vmax.f32 %v446_v24, 0.0  ;;  %v552_v18 = vmax.f32 %v518_v4, 0.0 }
 0x104   : > { %v550_v16 = vmax.f32 %v510_v13, 0.0 }
 0x105   : > { %v565_v38 = vadd.f32 %v564_v27, %v534_v31 }
 0x107   : > { %v566_v40 = vadd.f32 %v565_v38, %v535_v37 }
 0x109   : > { %v567_v44 = vadd.f32 %v566_v40, %v536_v39 }
 0x10b   : > { %v568_v45 = vadd.f32 %v567_v44, %v537_v41 }
 0x10d   : > { %v569_v51 = vadd.f32 %v568_v45, %v538_v47 }
 0x10f   : > { %v570_v55 = vadd.f32 %v569_v51, %v539_v50 }
 0x111   : > { %v571_v58 = vadd.f32 %v570_v55, %v540_v52 }
 0x113   : > { %v572_v28 = vadd.f32 %v571_v58, %v541_v56 }
 0x115   : > { %v573_v49 = vadd.f32 %v572_v28, %v542_v60 }
 0x117   : > { %v574_v63 = vadd.f32 %v573_v49, %v543_v61 }
 0x119   : > { %v575_v2 = vadd.f32 %v574_v63, %v544_v62 }
 0x11b   : > { %v576_v3 = vadd.f32 %v575_v2, %v545_v0 }
 0x11d   : > { %v577_v8 = vadd.f32 %v576_v3, %v546_v6 }
 0x11f   : > { %v578_v5 = vadd.f32 %v577_v8, %v547_v53 }
 0x121   : > { %v579_v10 = vadd.f32 %v578_v5, %v548_v11 }
 0x123   : > { %v580_v15 = vadd.f32 %v579_v10, %v549_v12 }
 0x125   : > { %v581_v9 = vadd.f32 %v580_v15, %v550_v16 }
 0x127   : > { %v582_v19 = vadd.f32 %v581_v9, %v551_v17 }
 0x129   : > { %v583_v21 = vadd.f32 %v582_v19, %v552_v18 }
 0x12b   : > { %v584_v22 = vrot.slane %v583_v21, 4 }
 0x12d   : > { %v585_v23 = vadd.f32 %v584_v22, %v583_v21 }
 0x12f   : > { %v586_v24 = vrot.slane %v585_v23, 2 }
 0x131   : > { %v587_v26 = vadd.f32 %v586_v24, %v585_v23 }
 0x133   : > { %v588_v27 = vrot.slane %v587_v26, 1 }
 0x135   : > { %v589_v30 = vadd.f32 %v588_v27, %v587_v26 }
 0x137   : > { %v590_v25 = vmul.f32 0.00390625, %v589_v30 }
 0x139   : > { %591 = vst [vmem:[%s166_s28] sm:$0x1] %v590_v25 }
 0x13a PF: > { %s13_s12 = sadd.s32 1, %s783_s12  }
 0x13b   : > { %p10_p4 = scmp.ge.s32.totalorder %s13_s12, 4  }
 0x13d   :  { %12 = sbr.rel (!%p10_p4) target bundleno = 1 (0x1), region = 62 }

</bundles_post_ra>
